<compile_context>
chip_gen: v7x
topology: tpu7x:2x2x1
jax: 0.10.0
libtpu: 0.0.40
codegen_flags: <defaults>
</compile_context>

<pallas_src>
import functools

import jax
import jax.numpy as jnp
from jax.experimental import pallas as pl
from jax.experimental.pallas import tpu as pltpu

BN_EPS = 1e-5            # nn.BatchNorm1d default eps
LEAKY_SLOPE = 0.01       # nn.LeakyReLU default negative_slope
LANE = 128
SUBLANE = 8              # activations stay f32 in VMEM -> 8-row granule
MAX_BATCH_TILE = 512     # large row tiles ~85% of HBM roofline on v6e
_DEFAULT_VMEM_BUDGET = 48 << 20   # conservative (v7x: 64 MiB physical per TC)


def _round_up(n, m):
    return ((n + m - 1) // m) * m


def _cdiv(a, b):
    return -(-a // b)


# ---------------------------------------------------------------------------
# Fused kernel: entire MLP forward for one batch tile.
# refs = (x_ref, w0, b0, w1, b1, ..., w_last, b_last, o_ref)
# Hidden layers: bf16 matmul (f32 acc) + (BN-folded) f32 bias + LeakyReLU;
# final pair: plain Linear.
# ---------------------------------------------------------------------------
def _mlp_kernel(n_hidden, x_ref, *refs):
    o_ref = refs[-1]
    wb = refs[:-1]
    h = x_ref[...]                                    # f32 activations
    for l in range(n_hidden):
        w = wb[2 * l][...]                            # bf16 weights -> MXU
        b = wb[2 * l + 1][...]                        # f32 bias (BN folded)
        h = jnp.dot(h.astype(w.dtype), w, preferred_element_type=jnp.float32) + b
        h = jnp.where(h >= 0, h, LEAKY_SLOPE * h)     # LeakyReLU(0.01), f32 VPU
        # TODO(synk): training-mode dropout (random mask) not modeled; eval => identity.
    w = wb[-2][...]
    b = wb[-1][...]
    o_ref[...] = (jnp.dot(h.astype(w.dtype), w, preferred_element_type=jnp.float32)
                  + b).astype(o_ref.dtype)


# ---------------------------------------------------------------------------
# Parameter construction (matches nn.Module __init__: xavier_uniform weights,
# zero bias, BatchNorm1d defaults).
# ---------------------------------------------------------------------------
def _xavier_uniform(key, fan_in, fan_out):
    # nn.init.xavier_uniform_ on a PyTorch weight of shape (out, in).
    bound = (6.0 / (fan_in + fan_out)) ** 0.5
    w_pt = jax.random.uniform(key, (fan_out, fan_in), jnp.float32, -bound, bound)
    return w_pt.T  # stored as (in, out) for x @ W


def init_mlp_params(key, input_dim, num_classes, expand_dim):
    dims = [input_dim] + list(expand_dim) + [num_classes]
    params = {"linear": [], "bn": []}
    for i in range(len(dims) - 1):
        key, sub = jax.random.split(key)
        w = _xavier_uniform(sub, dims[i], dims[i + 1])
        b = jnp.zeros((dims[i + 1],), jnp.float32)
        params["linear"].append((w, b))
    for d in expand_dim:                                  # BatchNorm1d defaults
        params["bn"].append((jnp.ones((d,), jnp.float32),   # gamma
                             jnp.zeros((d,), jnp.float32),  # beta
                             jnp.zeros((d,), jnp.float32),  # running_mean
                             jnp.ones((d,), jnp.float32)))  # running_var
    return params


def prepare_fused_params(params, input_dim, num_classes, expand_dim):
    """One-time (outside the kernel): fold BN into W/b, zero-pad all OUTPUT
    feature dims to 128-lane multiples (input dim of the first layer stays at
    the true size so x never needs a lane pad), cast weights to bf16."""
    dims = [input_dim] + list(expand_dim) + [num_classes]
    n_hidden = len(expand_dim)
    dims_p = [input_dim] + [_round_up(d, LANE) for d in dims[1:]]
    ws, bs = [], []
    for i, (w, b) in enumerate(params["linear"]):
        if i < n_hidden:
            g, be, m, v = params["bn"][i]
            scale = g * jax.lax.rsqrt(v + BN_EPS)
            w_f = w * scale[None, :]
            b_f = (b - m) * scale + be
        else:
            w_f, b_f = w, b
        wp = (jnp.zeros((dims_p[i], dims_p[i + 1]), jnp.float32)
              .at[:dims[i], :dims[i + 1]].set(w_f)).astype(jnp.bfloat16)
        bp = (jnp.zeros((1, dims_p[i + 1]), jnp.float32)
              .at[:, :dims[i + 1]].set(b_f))
        ws.append(wp)
        bs.append(bp)
    return ws, bs


# ---------------------------------------------------------------------------
# Tile / VMEM planning.
# ---------------------------------------------------------------------------
def _vmem_budget_and_cores():
    budget, n_tc = _DEFAULT_VMEM_BUDGET, 1
    try:
        info = pltpu.get_tpu_info()
        cap = getattr(info, "vmem_capacity_bytes", None)
        if cap:
            budget = int(cap) * 3 // 4
        for attr in ("num_cores", "cores_per_chip", "core_count"):
            v = getattr(info, attr, None)
            if v:
                n_tc = int(v)
                break
    except Exception:
        pass
    return budget, n_tc


def _pick_batch_tile(B, Din, Cp, ws, bs, budget, n_tc):
    w_bytes = sum(int(w.size) * w.dtype.itemsize for w in ws)
    b_bytes = sum(int(b.size) * b.dtype.itemsize for b in bs)
    max_feat = max([Din, Cp] + [int(w.shape[1]) for w in ws])

    def need(tb):
        return (2 * tb * Din * 4          # x tile, double-buffered
                + 2 * tb * Cp * 4         # out tile, double-buffered
                + w_bytes + b_bytes       # pinned weights/biases, single buffer
                + 3 * tb * max_feat * 4   # live f32 acts + bf16 casts + slack
                + (2 << 20))              # misc compiler scratch headroom

    tb = min(MAX_BATCH_TILE, _round_up(B, SUBLANE))
    while tb > SUBLANE and need(tb) > budget:
        tb = _round_up(max(tb // 2, SUBLANE), SUBLANE)
    if n_tc >= 2 and B >= 2 * SUBLANE:
        # Give the 'parallel' batch axis >= 2 grid steps so both TCs do work.
        tb = min(tb, _round_up(_cdiv(B, 2), SUBLANE))
    n_tiles = _cdiv(B, tb)
    tb = _round_up(_cdiv(B, n_tiles), SUBLANE)   # even tiles, minimal remainder pad
    vmem_limit = int(min(max(need(tb) + w_bytes, 32 << 20),
                         max(budget, 32 << 20)))
    return tb, n_tiles, vmem_limit


# ---------------------------------------------------------------------------
# pallas_call wrapper: single fused call, batch grid, resident weights.
# ---------------------------------------------------------------------------
def mlp_forward_fused(ws, bs, x, num_classes):
    B, Din = x.shape
    assert Din == ws[0].shape[0], "first-layer weight must match input dim"
    Cp = ws[-1].shape[1]
    n_hidden = len(ws) - 1

    budget, n_tc = _vmem_budget_and_cores()
    TB, n_tiles, vmem_limit = _pick_batch_tile(B, Din, Cp, ws, bs, budget, n_tc)
    Bp = n_tiles * TB

    # Only the batch remainder is padded; contraction dim of x is untouched and
    # no copy is materialized when B already fills the tiles.
    x_pad = x if Bp == B else jnp.pad(x, ((0, Bp - B), (0, 0)))

    flat_wb = [a for pair in zip(ws, bs) for a in pair]

    def run(single_buffer_weights):
        in_specs = [pl.BlockSpec((TB, Din), lambda i: (i, 0))]   # pipelined x tile
        pinned_kw = ({"pipeline_mode": pl.Buffered(1)}
                     if single_buffer_weights else {})
        for w, b in zip(ws, bs):
            # Constant index_map => weights/biases stay VMEM-resident.
            in_specs.append(pl.BlockSpec(w.shape, lambda i: (0, 0), **pinned_kw))
            in_specs.append(pl.BlockSpec(b.shape, lambda i: (0, 0), **pinned_kw))
        return pl.pallas_call(
            functools.partial(_mlp_kernel, n_hidden),
            out_shape=jax.ShapeDtypeStruct((Bp, Cp), x.dtype),
            grid=(n_tiles,),
            in_specs=in_specs,
            out_specs=pl.BlockSpec((TB, Cp), lambda i: (i, 0)),
            compiler_params=pltpu.CompilerParams(
                dimension_semantics=("parallel",),
                vmem_limit_bytes=vmem_limit),
        )(x_pad, *flat_wb)

    try:
        out_pad = run(True)      # single-buffer the pinned weights
    except Exception:
        out_pad = run(False)     # fall back to default double-buffering

    return out_pad[:B, :num_classes]


# ---------------------------------------------------------------------------
if __name__ == "__main__":
    INPUT_DIM = 32
    NUM_CLASSES = 10
    EXPAND_DIM = [64, 32]
    DROPOUT_VAL = 0.1  # eval-mode => identity
    BATCH = 8

    key = jax.random.PRNGKey(0)
    k_params, k_x = jax.random.split(key)
    params = init_mlp_params(k_params, INPUT_DIM, NUM_CLASSES, EXPAND_DIM)
    x = jax.random.normal(k_x, (BATCH, INPUT_DIM), jnp.float32)

    ws, bs = prepare_fused_params(params, INPUT_DIM, NUM_CLASSES, EXPAND_DIM)
    out = mlp_forward_fused(ws, bs, x, NUM_CLASSES)
    out = jax.block_until_ready(out)

    assert out.shape == (BATCH, NUM_CLASSES), out.shape
    assert bool(jnp.all(jnp.isfinite(out)))

    # (a) Tight check: pure-JAX replay of the SAME fused bf16-weight math
    #     -> validates the kernel itself.
    def fused_ref(ws, bs, xx):
        h = xx
        for l in range(len(ws) - 1):
            h = jnp.dot(h.astype(ws[l].dtype), ws[l],
                        preferred_element_type=jnp.float32) + bs[l]
            h = jnp.where(h >= 0, h, LEAKY_SLOPE * h)
        return (jnp.dot(h.astype(ws[-1].dtype), ws[-1],
                        preferred_element_type=jnp.float32) + bs[-1])

    ref_fused = fused_ref(ws, bs, x)[:, :NUM_CLASSES]
    assert bool(jnp.allclose(out, ref_fused, atol=1e-4, rtol=1e-4)), (
        float(jnp.max(jnp.abs(out - ref_fused))))

    # (b) Looser check: ORIGINAL unfolded f32 math (Linear -> BN -> LeakyReLU
    #     -> Linear) -> validates BN folding + bounds the bf16 weight error.
    def orig_ref(params, xx):
        n = len(params["linear"])
        for i in range(n - 1):
            w, b = params["linear"][i]
            g, be, m, v = params["bn"][i]
            y = xx @ w + b
            y = (y - m) / jnp.sqrt(v + BN_EPS) * g + be
            xx = jnp.where(y >= 0, y, LEAKY_SLOPE * y)
        w, b = params["linear"][-1]
        return xx @ w + b

    ref_f32 = orig_ref(params, x)
    assert bool(jnp.allclose(out, ref_f32, atol=5e-2, rtol=5e-2)), (
        float(jnp.max(jnp.abs(out - ref_f32))))

    print("KERNEL_OK")
</pallas_src>

<mosaic_0001>
module attributes {stable_mosaic.version = 11 : i64} {
  func.func @_mlp_kernel(%arg0: i32, %arg1: memref<8x32xf32, #tpu.memory_space<vmem>>, %arg2: memref<32x128xbf16, #tpu.memory_space<vmem>>, %arg3: memref<1x128xf32, #tpu.memory_space<vmem>>, %arg4: memref<128x128xbf16, #tpu.memory_space<vmem>>, %arg5: memref<1x128xf32, #tpu.memory_space<vmem>>, %arg6: memref<128x128xbf16, #tpu.memory_space<vmem>>, %arg7: memref<1x128xf32, #tpu.memory_space<vmem>>, %arg8: memref<8x128xf32, #tpu.memory_space<vmem>>) attributes {dimension_semantics = [#tpu.dimension_semantics<parallel>], iteration_bounds = array<i64: 1>, scalar_prefetch = 0 : i64, scratch_operands = 0 : i64, tpu.core_type = #tpu.core_type<tc>, window_params = [{transform_indices = @transform_0, window_bounds = array<i64: 8, 32>}, {pipeline_mode = #tpu.pipeline_mode<synchronous>, transform_indices = @transform_1, window_bounds = array<i64: 32, 128>}, {pipeline_mode = #tpu.pipeline_mode<synchronous>, transform_indices = @transform_2, window_bounds = array<i64: 1, 128>}, {pipeline_mode = #tpu.pipeline_mode<synchronous>, transform_indices = @transform_3, window_bounds = array<i64: 128, 128>}, {pipeline_mode = #tpu.pipeline_mode<synchronous>, transform_indices = @transform_4, window_bounds = array<i64: 1, 128>}, {pipeline_mode = #tpu.pipeline_mode<synchronous>, transform_indices = @transform_5, window_bounds = array<i64: 128, 128>}, {pipeline_mode = #tpu.pipeline_mode<synchronous>, transform_indices = @transform_6, window_bounds = array<i64: 1, 128>}, {transform_indices = @transform_7, window_bounds = array<i64: 8, 128>}]} {
    %c0 = arith.constant 0 : index
    %c0_0 = arith.constant 0 : index
    %0 = vector.load %arg1[%c0, %c0_0] : memref<8x32xf32, #tpu.memory_space<vmem>>, vector<8x32xf32>
    %c0_1 = arith.constant 0 : index
    %c0_2 = arith.constant 0 : index
    %1 = vector.load %arg2[%c0_1, %c0_2] : memref<32x128xbf16, #tpu.memory_space<vmem>>, vector<32x128xbf16>
    %c0_3 = arith.constant 0 : index
    %c0_4 = arith.constant 0 : index
    %2 = vector.load %arg3[%c0_3, %c0_4] : memref<1x128xf32, #tpu.memory_space<vmem>>, vector<1x128xf32>
    %3 = arith.truncf %0 : vector<8x32xf32> to vector<8x32xbf16>
    %cst = arith.constant dense<0.000000e+00> : vector<8x128xf32>
    %4 = tpu.matmul %3, %1, %cst {dimension_numbers = #tpu.dot_dimension_numbers<[1], [0], [0], [1], [0, 0, 1, 1], [], []>} : vector<8x32xbf16>, vector<32x128xbf16>, vector<8x128xf32> -> vector<8x128xf32>
    %5 = vector.broadcast %2 : vector<1x128xf32> to vector<8x128xf32>
    %6 = arith.addf %4, %5 : vector<8x128xf32>
    %cst_5 = arith.constant 0.000000e+00 : f32
    %7 = vector.broadcast %cst_5 : f32 to vector<8x128xf32>
    %8 = arith.cmpf oge, %6, %7 : vector<8x128xf32>
    %cst_6 = arith.constant 0.00999999977 : f32
    %9 = vector.broadcast %cst_6 : f32 to vector<8x128xf32>
    %10 = arith.mulf %9, %6 : vector<8x128xf32>
    %11 = arith.select %8, %6, %10 : vector<8x128xi1>, vector<8x128xf32>
    %c0_7 = arith.constant 0 : index
    %c0_8 = arith.constant 0 : index
    %12 = vector.load %arg4[%c0_7, %c0_8] : memref<128x128xbf16, #tpu.memory_space<vmem>>, vector<128x128xbf16>
    %c0_9 = arith.constant 0 : index
    %c0_10 = arith.constant 0 : index
    %13 = vector.load %arg5[%c0_9, %c0_10] : memref<1x128xf32, #tpu.memory_space<vmem>>, vector<1x128xf32>
    %14 = arith.truncf %11 : vector<8x128xf32> to vector<8x128xbf16>
    %cst_11 = arith.constant dense<0.000000e+00> : vector<8x128xf32>
    %15 = tpu.matmul %14, %12, %cst_11 {dimension_numbers = #tpu.dot_dimension_numbers<[1], [0], [0], [1], [0, 0, 1, 1], [], []>} : vector<8x128xbf16>, vector<128x128xbf16>, vector<8x128xf32> -> vector<8x128xf32>
    %16 = vector.broadcast %13 : vector<1x128xf32> to vector<8x128xf32>
    %17 = arith.addf %15, %16 : vector<8x128xf32>
    %cst_12 = arith.constant 0.000000e+00 : f32
    %18 = vector.broadcast %cst_12 : f32 to vector<8x128xf32>
    %19 = arith.cmpf oge, %17, %18 : vector<8x128xf32>
    %cst_13 = arith.constant 0.00999999977 : f32
    %20 = vector.broadcast %cst_13 : f32 to vector<8x128xf32>
    %21 = arith.mulf %20, %17 : vector<8x128xf32>
    %22 = arith.select %19, %17, %21 : vector<8x128xi1>, vector<8x128xf32>
    %c0_14 = arith.constant 0 : index
    %c0_15 = arith.constant 0 : index
    %23 = vector.load %arg6[%c0_14, %c0_15] : memref<128x128xbf16, #tpu.memory_space<vmem>>, vector<128x128xbf16>
    %c0_16 = arith.constant 0 : index
    %c0_17 = arith.constant 0 : index
    %24 = vector.load %arg7[%c0_16, %c0_17] : memref<1x128xf32, #tpu.memory_space<vmem>>, vector<1x128xf32>
    %25 = arith.truncf %22 : vector<8x128xf32> to vector<8x128xbf16>
    %cst_18 = arith.constant dense<0.000000e+00> : vector<8x128xf32>
    %26 = tpu.matmul %25, %23, %cst_18 {dimension_numbers = #tpu.dot_dimension_numbers<[1], [0], [0], [1], [0, 0, 1, 1], [], []>} : vector<8x128xbf16>, vector<128x128xbf16>, vector<8x128xf32> -> vector<8x128xf32>
    %27 = vector.broadcast %24 : vector<1x128xf32> to vector<8x128xf32>
    %28 = arith.addf %26, %27 : vector<8x128xf32>
    %c0_19 = arith.constant 0 : index
    %c0_20 = arith.constant 0 : index
    %29 = vector.load %arg8[%c0_19, %c0_20] : memref<8x128xf32, #tpu.memory_space<vmem>>, vector<8x128xf32>
    tpu.vector_store %arg8[%c0_19, %c0_20], %28 {strides = array<i32>} : memref<8x128xf32, #tpu.memory_space<vmem>>, vector<8x128xf32>,
    return
  }
  func.func @transform_0(%arg0: i32) -> (i32, i32) {
    %c0_i32 = arith.constant 0 : i32
    %c0_i32_0 = arith.constant 0 : i32
    return %arg0, %c0_i32 : i32, i32
  }
  func.func @transform_1(%arg0: i32) -> (i32, i32) {
    %c0_i32 = arith.constant 0 : i32
    %c0_i32_0 = arith.constant 0 : i32
    %c0_i32_1 = arith.constant 0 : i32
    return %c0_i32, %c0_i32_0 : i32, i32
  }
  func.func @transform_2(%arg0: i32) -> (i32, i32) {
    %c0_i32 = arith.constant 0 : i32
    %c0_i32_0 = arith.constant 0 : i32
    %c0_i32_1 = arith.constant 0 : i32
    return %c0_i32, %c0_i32_0 : i32, i32
  }
  func.func @transform_3(%arg0: i32) -> (i32, i32) {
    %c0_i32 = arith.constant 0 : i32
    %c0_i32_0 = arith.constant 0 : i32
    %c0_i32_1 = arith.constant 0 : i32
    return %c0_i32, %c0_i32_0 : i32, i32
  }
  func.func @transform_4(%arg0: i32) -> (i32, i32) {
    %c0_i32 = arith.constant 0 : i32
    %c0_i32_0 = arith.constant 0 : i32
    %c0_i32_1 = arith.constant 0 : i32
    return %c0_i32, %c0_i32_0 : i32, i32
  }
  func.func @transform_5(%arg0: i32) -> (i32, i32) {
    %c0_i32 = arith.constant 0 : i32
    %c0_i32_0 = arith.constant 0 : i32
    %c0_i32_1 = arith.constant 0 : i32
    return %c0_i32, %c0_i32_0 : i32, i32
  }
  func.func @transform_6(%arg0: i32) -> (i32, i32) {
    %c0_i32 = arith.constant 0 : i32
    %c0_i32_0 = arith.constant 0 : i32
    %c0_i32_1 = arith.constant 0 : i32
    return %c0_i32, %c0_i32_0 : i32, i32
  }
  func.func @transform_7(%arg0: i32) -> (i32, i32) {
    %c0_i32 = arith.constant 0 : i32
    %c0_i32_0 = arith.constant 0 : i32
    return %arg0, %c0_i32 : i32, i32
  }
}

module attributes {stable_mosaic.version = 11 : i64} {
  func.func @_mlp_kernel(%arg0: i32, %arg1: memref<8x32xf32, #tpu.memory_space<vmem>>, %arg2: memref<32x128xbf16, #tpu.memory_space<vmem>>, %arg3: memref<1x128xf32, #tpu.memory_space<vmem>>, %arg4: memref<128x128xbf16, #tpu.memory_space<vmem>>, %arg5: memref<1x128xf32, #tpu.memory_space<vmem>>, %arg6: memref<128x128xbf16, #tpu.memory_space<vmem>>, %arg7: memref<1x128xf32, #tpu.memory_space<vmem>>, %arg8: memref<8x128xf32, #tpu.memory_space<vmem>>) attributes {dimension_semantics = [#tpu.dimension_semantics<parallel>], iteration_bounds = array<i64: 1>, scalar_prefetch = 0 : i64, scratch_operands = 0 : i64, tpu.core_type = #tpu.core_type<tc>, window_params = [{transform_indices = @transform_0, window_bounds = array<i64: 8, 32>}, {pipeline_mode = #tpu.pipeline_mode<synchronous>, transform_indices = @transform_1, window_bounds = array<i64: 32, 128>}, {pipeline_mode = #tpu.pipeline_mode<synchronous>, transform_indices = @transform_2, window_bounds = array<i64: 1, 128>}, {pipeline_mode = #tpu.pipeline_mode<synchronous>, transform_indices = @transform_3, window_bounds = array<i64: 128, 128>}, {pipeline_mode = #tpu.pipeline_mode<synchronous>, transform_indices = @transform_4, window_bounds = array<i64: 1, 128>}, {pipeline_mode = #tpu.pipeline_mode<synchronous>, transform_indices = @transform_5, window_bounds = array<i64: 128, 128>}, {pipeline_mode = #tpu.pipeline_mode<synchronous>, transform_indices = @transform_6, window_bounds = array<i64: 1, 128>}, {transform_indices = @transform_7, window_bounds = array<i64: 8, 128>}]} {
    %c0 = arith.constant 0 : index
    %c0_0 = arith.constant 0 : index
    %0 = vector.load %arg1[%c0, %c0_0] : memref<8x32xf32, #tpu.memory_space<vmem>>, vector<8x32xf32>
    %c0_1 = arith.constant 0 : index
    %c0_2 = arith.constant 0 : index
    %1 = vector.load %arg2[%c0_1, %c0_2] : memref<32x128xbf16, #tpu.memory_space<vmem>>, vector<32x128xbf16>
    %c0_3 = arith.constant 0 : index
    %c0_4 = arith.constant 0 : index
    %2 = vector.load %arg3[%c0_3, %c0_4] : memref<1x128xf32, #tpu.memory_space<vmem>>, vector<1x128xf32>
    %3 = arith.truncf %0 : vector<8x32xf32> to vector<8x32xbf16>
    %cst = arith.constant dense<0.000000e+00> : vector<8x128xf32>
    %4 = tpu.matmul %3, %1, %cst {dimension_numbers = #tpu.dot_dimension_numbers<[1], [0], [0], [1], [0, 0, 1, 1], [], []>} : vector<8x32xbf16>, vector<32x128xbf16>, vector<8x128xf32> -> vector<8x128xf32>
    %5 = vector.broadcast %2 : vector<1x128xf32> to vector<8x128xf32>
    %6 = arith.addf %4, %5 : vector<8x128xf32>
    %cst_5 = arith.constant 0.000000e+00 : f32
    %7 = vector.broadcast %cst_5 : f32 to vector<8x128xf32>
    %8 = arith.cmpf oge, %6, %7 : vector<8x128xf32>
    %cst_6 = arith.constant 0.00999999977 : f32
    %9 = vector.broadcast %cst_6 : f32 to vector<8x128xf32>
    %10 = arith.mulf %9, %6 : vector<8x128xf32>
    %11 = arith.select %8, %6, %10 : vector<8x128xi1>, vector<8x128xf32>
    %c0_7 = arith.constant 0 : index
    %c0_8 = arith.constant 0 : index
    %12 = vector.load %arg4[%c0_7, %c0_8] : memref<128x128xbf16, #tpu.memory_space<vmem>>, vector<128x128xbf16>
    %c0_9 = arith.constant 0 : index
    %c0_10 = arith.constant 0 : index
    %13 = vector.load %arg5[%c0_9, %c0_10] : memref<1x128xf32, #tpu.memory_space<vmem>>, vector<1x128xf32>
    %14 = arith.truncf %11 : vector<8x128xf32> to vector<8x128xbf16>
    %cst_11 = arith.constant dense<0.000000e+00> : vector<8x128xf32>
    %15 = tpu.matmul %14, %12, %cst_11 {dimension_numbers = #tpu.dot_dimension_numbers<[1], [0], [0], [1], [0, 0, 1, 1], [], []>} : vector<8x128xbf16>, vector<128x128xbf16>, vector<8x128xf32> -> vector<8x128xf32>
    %16 = vector.broadcast %13 : vector<1x128xf32> to vector<8x128xf32>
    %17 = arith.addf %15, %16 : vector<8x128xf32>
    %cst_12 = arith.constant 0.000000e+00 : f32
    %18 = vector.broadcast %cst_12 : f32 to vector<8x128xf32>
    %19 = arith.cmpf oge, %17, %18 : vector<8x128xf32>
    %cst_13 = arith.constant 0.00999999977 : f32
    %20 = vector.broadcast %cst_13 : f32 to vector<8x128xf32>
    %21 = arith.mulf %20, %17 : vector<8x128xf32>
    %22 = arith.select %19, %17, %21 : vector<8x128xi1>, vector<8x128xf32>
    %c0_14 = arith.constant 0 : index
    %c0_15 = arith.constant 0 : index
    %23 = vector.load %arg6[%c0_14, %c0_15] : memref<128x128xbf16, #tpu.memory_space<vmem>>, vector<128x128xbf16>
    %c0_16 = arith.constant 0 : index
    %c0_17 = arith.constant 0 : index
    %24 = vector.load %arg7[%c0_16, %c0_17] : memref<1x128xf32, #tpu.memory_space<vmem>>, vector<1x128xf32>
    %25 = arith.truncf %22 : vector<8x128xf32> to vector<8x128xbf16>
    %cst_18 = arith.constant dense<0.000000e+00> : vector<8x128xf32>
    %26 = tpu.matmul %25, %23, %cst_18 {dimension_numbers = #tpu.dot_dimension_numbers<[1], [0], [0], [1], [0, 0, 1, 1], [], []>} : vector<8x128xbf16>, vector<128x128xbf16>, vector<8x128xf32> -> vector<8x128xf32>
    %27 = vector.broadcast %24 : vector<1x128xf32> to vector<8x128xf32>
    %28 = arith.addf %26, %27 : vector<8x128xf32>
    %c0_19 = arith.constant 0 : index
    %c0_20 = arith.constant 0 : index
    %29 = vector.load %arg8[%c0_19, %c0_20] : memref<8x128xf32, #tpu.memory_space<vmem>>, vector<8x128xf32>
    tpu.vector_store %arg8[%c0_19, %c0_20], %28 {strides = array<i32>} : memref<8x128xf32, #tpu.memory_space<vmem>>, vector<8x128xf32>,
    return
  }
  func.func @transform_0(%arg0: i32) -> (i32, i32) {
    %c0_i32 = arith.constant 0 : i32
    %c0_i32_0 = arith.constant 0 : i32
    return %arg0, %c0_i32 : i32, i32
  }
  func.func @transform_1(%arg0: i32) -> (i32, i32) {
    %c0_i32 = arith.constant 0 : i32
    %c0_i32_0 = arith.constant 0 : i32
    %c0_i32_1 = arith.constant 0 : i32
    return %c0_i32, %c0_i32_0 : i32, i32
  }
  func.func @transform_2(%arg0: i32) -> (i32, i32) {
    %c0_i32 = arith.constant 0 : i32
    %c0_i32_0 = arith.constant 0 : i32
    %c0_i32_1 = arith.constant 0 : i32
    return %c0_i32, %c0_i32_0 : i32, i32
  }
  func.func @transform_3(%arg0: i32) -> (i32, i32) {
    %c0_i32 = arith.constant 0 : i32
    %c0_i32_0 = arith.constant 0 : i32
    %c0_i32_1 = arith.constant 0 : i32
    return %c0_i32, %c0_i32_0 : i32, i32
  }
  func.func @transform_4(%arg0: i32) -> (i32, i32) {
    %c0_i32 = arith.constant 0 : i32
    %c0_i32_0 = arith.constant 0 : i32
    %c0_i32_1 = arith.constant 0 : i32
    return %c0_i32, %c0_i32_0 : i32, i32
  }
  func.func @transform_5(%arg0: i32) -> (i32, i32) {
    %c0_i32 = arith.constant 0 : i32
    %c0_i32_0 = arith.constant 0 : i32
    %c0_i32_1 = arith.constant 0 : i32
    return %c0_i32, %c0_i32_0 : i32, i32
  }
  func.func @transform_6(%arg0: i32) -> (i32, i32) {
    %c0_i32 = arith.constant 0 : i32
    %c0_i32_0 = arith.constant 0 : i32
    %c0_i32_1 = arith.constant 0 : i32
    return %c0_i32, %c0_i32_0 : i32, i32
  }
  func.func @transform_7(%arg0: i32) -> (i32, i32) {
    %c0_i32 = arith.constant 0 : i32
    %c0_i32_0 = arith.constant 0 : i32
    return %arg0, %c0_i32 : i32, i32
  }
}

</mosaic_0001>

<bundles_post_ra>
// kernel: tpu_custom_call.1
= control target key start
LH: loop header
LB: loop body
LE: loop exit
PB: predicated region body
PF: predicated region fallthrough
CT: control target
= control target key end

     0   :  { %12 = vsyncpa [#allocation3], 0  ;;  %s785_s0 = inlined_call_operand.hbm [shape: f32[8,32], index: 0, kind: input, shape index: {}]   ;;  %s786_s1 = inlined_call_operand.hbm [shape: bf16[32,128], index: 1, kind: input, shape index: {}]   ;;  %s787_s2 = inlined_call_operand.vmem [shape: f32[1,128], index: 2, kind: input, shape index: {}]   ;;  %s788_s3 = inlined_call_operand.hbm [shape: bf16[128,128], index: 3, kind: input, shape index: {}]   ;;  %s789_s4 = inlined_call_operand.vmem [shape: f32[1,128], index: 4, kind: input, shape index: {}]   ;;  %s790_s5 = inlined_call_operand.hbm [shape: bf16[128,128], index: 5, kind: input, shape index: {}]   ;;  %s791_s6 = inlined_call_operand.vmem [shape: f32[1,128], index: 6, kind: input, shape index: {}]   ;;  %s792_s7 = inlined_call_operand.hbm [shape: f32[8,128], index: 7, kind: output, shape index: {}]  }
   0x1   :  { %13 = vsyncpa [#allocation6], 0 }
   0x2   :  { %14 = vsyncpa [#allocation9], 0 }
   0x3   :  { %15 = vsyncpa [#allocation4], 0  ;;  %s634_s24 = smov [#allocation5]   ;;  %s516_s28 = scalar_lea.hbm %s786_s1, 256 }
   0x4   :  { %s31_s25 = sshll.u32 %s634_s24, 4  ;;  %p517_p0 = scmp.ne.s32.totalorder %s786_s1, %s516_s28  ;;  %s32_s25 = int_to_ptr.vmem [resolvable:$true] %s31_s25 }
   0x5   :  { %p520_p1 = scmp.lt.u32.totalorder %s516_s28, %s786_s1 }
   0x7   :  { %p522_p2 = pnand %p520_p1, %p517_p0 }
   0x9   :  { %525 = shalt.err (!%p522_p2)
}
   0xa   :  { %s526_s10 = scalar_lea.vmem %s32_s25, 256  ;;  %p531_p4 = scmp.lt.s32.totalorder %s32_s25, %s32_s25 }
   0xb   :  { %p527_p3 = scmp.ne.s32.totalorder %s32_s25, %s526_s10  ;;  %p532_p5 = scmp.lt.s32.totalorder %s526_s10, %s526_s10 }
   0xd   :  { %p533_p6 = por %p532_p5, %p531_p4 }
   0xf   :  { %p534_p7 = pnand %p533_p6, %p527_p3 }
  0x11   :  { %537 = shalt.err (!%p534_p7)
}
  0x12   :  { %s635_s11 = smov 64   ;;  %s636_s12 = smov 4  }
  0x13   :  { %37 = dma.hbm_to_vmem [thread:$0]  %s786_s1, 256, %s32_s25, [#allocation6], %s635_s11, %s635_s11, %s636_s12  }
  0x14   :  { %s637_s15 = smov [#allocation2]   ;;  %s638_s17 = smov [#allocation7]  }
  0x15   :  { %s22_s16 = sshll.u32 %s637_s15, 4  ;;  %s45_s18 = sshll.u32 %s638_s17, 4  ;;  %s23_s16 = int_to_ptr.vmem [resolvable:$true] %s22_s16  ;;  %s46_s18 = int_to_ptr.vmem [resolvable:$true] %s45_s18 }
  0x16   :  { %s538_s21 = scalar_lea.hbm %s785_s0, 128 }
  0x17   :  { %p539_p8 = scmp.ne.s32.totalorder %s785_s0, %s538_s21  ;;  %p542_p9 = scmp.lt.u32.totalorder %s538_s21, %s785_s0 }
  0x19   :  { %p544_p10 = pnand %p542_p9, %p539_p8 }
  0x1b   :  { %547 = shalt.err (!%p544_p10)
}
  0x1c   :  { %s548_s1 = scalar_lea.vmem %s23_s16, 128  ;;  %p553_p12 = scmp.lt.s32.totalorder %s23_s16, %s23_s16 }
  0x1d   :  { %p549_p11 = scmp.ne.s32.totalorder %s23_s16, %s548_s1  ;;  %p554_p13 = scmp.lt.s32.totalorder %s548_s1, %s548_s1 }
  0x1f   :  { %p555_p0 = por %p554_p13, %p553_p12 }
  0x21   :  { %p556_p1 = pnand %p555_p0, %p549_p11 }
  0x23   :  { %559 = shalt.err (!%p556_p1)
}
  0x24   :  { %25 = dma.hbm_to_vmem [thread:$0]  %s785_s0, 128, %s23_s16, [#allocation3]  }
  0x25   :  { %s560_s30 = scalar_lea.hbm %s788_s3, 1024 }
  0x26   :  { %p561_p2 = scmp.ne.s32.totalorder %s788_s3, %s560_s30  ;;  %p564_p3 = scmp.lt.u32.totalorder %s560_s30, %s788_s3 }
  0x28   :  { %p566_p4 = pnand %p564_p3, %p561_p2 }
  0x2a   :  { %569 = shalt.err (!%p566_p4)
}
  0x2b   :  { %s570_s14 = scalar_lea.vmem %s46_s18, 1024  ;;  %p575_p6 = scmp.lt.s32.totalorder %s46_s18, %s46_s18 }
  0x2c   :  { %p571_p5 = scmp.ne.s32.totalorder %s46_s18, %s570_s14  ;;  %p576_p7 = scmp.lt.s32.totalorder %s570_s14, %s570_s14 }
  0x2e   :  { %p577_p8 = por %p576_p7, %p575_p6 }
  0x30   :  { %p578_p9 = pnand %p577_p8, %p571_p5 }
  0x32   :  { %581 = shalt.err (!%p578_p9)
}
  0x33   :  { %51 = dma.hbm_to_vmem [thread:$0]  %s788_s3, 1024, %s46_s18, [#allocation6], %s635_s11, %s635_s11, %s636_s12  }
  0x34   :  { %s639_s16 = smov [#allocation8]   ;;  %s582_s21 = scalar_lea.hbm %s790_s5, 1024 }
  0x35   :  { %s59_s17 = sshll.u32 %s639_s16, 4  ;;  %p583_p10 = scmp.ne.s32.totalorder %s790_s5, %s582_s21  ;;  %s60_s17 = int_to_ptr.vmem [resolvable:$true] %s59_s17 }
  0x36   :  { %p586_p11 = scmp.lt.u32.totalorder %s582_s21, %s790_s5 }
  0x38   :  { %p588_p12 = pnand %p586_p11, %p583_p10 }
  0x3a   :  { %591 = shalt.err (!%p588_p12)
}
  0x3b   :  { %s592_s1 = scalar_lea.vmem %s60_s17, 1024  ;;  %p597_p0 = scmp.lt.s32.totalorder %s60_s17, %s60_s17 }
  0x3c   :  { %p593_p13 = scmp.ne.s32.totalorder %s60_s17, %s592_s1  ;;  %p598_p1 = scmp.lt.s32.totalorder %s592_s1, %s592_s1 }
  0x3e   :  { %p599_p2 = por %p598_p1, %p597_p0 }
  0x40   :  { %p600_p3 = pnand %p599_p2, %p593_p13 }
  0x42   :  { %603 = shalt.err (!%p600_p3)
}
  0x43   :  { %65 = dma.hbm_to_vmem [thread:$0]  %s790_s5, 1024, %s60_s17, [#allocation9], %s635_s11, %s635_s11, %s636_s12  }
  0x44   :  { %626 = dma.done.wait [#allocation3], 128  }
  0x45   :  { %627 = vsyncadd [#allocation3], 4294967168 }
  0x46   :  { %628 = dma.done.wait [#allocation6], 1280  }
  0x47   :  { %629 = vsyncadd [#allocation6], 4294966016 }
  0x48   :  { %630 = dma.done.wait [#allocation9], 1024  }
  0x49   :  { %631 = vsyncadd [#allocation9], 4294966272  ;;  %v640_v0 = vmov 0.0   ;;  %vm641_vm0 = vmmov 0   ;;  %v498_v1 = vld [vmem:[#allocation5] sm:$0xff]   ;;  %v499_v2 = vld [vmem:[#allocation5 + $0x8] sm:$0xff]  }
  0x4a   :  { %441 = vmatprep.subr.bf16.mxu0 %v640_v0  ;;  %445 = vmatprep.mubr.msk.bf16.mxu0 %vm641_vm0, %v640_v0  ;;  %v81_v3 = vld [vmem:[#allocation2] sm:$0xff]  ;;  %v500_v4 = vld [vmem:[#allocation7] sm:$0xff]   ;;  %vm106_vm1 = vcmask 261120   ;;  %v502_v7 = vld [vmem:[#allocation7 + $0x10] sm:$0xff]   ;;  %s642_s28 = smov [#allocation10]  }
  0x4b   :  { %449 = vmatprep.subr.bf16.mxu1 %v640_v0  ;;  %465 = vmatprep.mubr.msk.bf16.mxu1 %vm641_vm0, %v640_v0  ;;  %v87_v5 = vpack.c.bf16 %v81_v3, %v81_v3  ;;  %v501_v6 = vld [vmem:[#allocation7 + $0x8] sm:$0xff]   ;;  %v503_v8 = vld [vmem:[#allocation7 + $0x18] sm:$0xff]   ;;  %v504_v9 = vld [vmem:[#allocation7 + $0x20] sm:$0xff]   ;;  %s387_s29 = sshll.u32 %s642_s28, 4  ;;  %s388_s29 = int_to_ptr.vmem [resolvable:$true] %s387_s29 }
  0x4c   :  { %442 = vmatpush3.bf16.msra.mxu0 %v498_v1  ;;  %450 = vmatpush3.bf16.msra.mxu1 %v500_v4  ;;  %v505_v10 = vld [vmem:[#allocation7 + $0x28] sm:$0xff]   ;;  %v506_v11 = vld [vmem:[#allocation7 + $0x30] sm:$0xff]   ;;  %v507_v12 = vld [vmem:[#allocation7 + $0x38] sm:$0xff]   ;;  %p609_p5 = scmp.lt.s32.totalorder %s388_s29, %s388_s29 }
  0x4d   :  { %443 = vmatprep.subr.bf16.mxu0 %v640_v0  ;;  %451 = vmatprep.subr.bf16.mxu1 %v640_v0  ;;  %v508_v13 = vld [vmem:[#allocation8] sm:$0xff]   ;;  %v509_v14 = vld [vmem:[#allocation8 + $0x8] sm:$0xff]   ;;  %v510_v15 = vld [vmem:[#allocation8 + $0x10] sm:$0xff]  }
  0x4e   :  { %v511_v16 = vld [vmem:[#allocation8 + $0x18] sm:$0xff]   ;;  %v512_v17 = vld [vmem:[#allocation8 + $0x20] sm:$0xff]   ;;  %v513_v18 = vld [vmem:[#allocation8 + $0x28] sm:$0xff]  }
  0x4f   :  { %v398_v19 = vld [vmem:[%s787_s2] ss:$0 sm:$0xff]  ;;  %v514_v28 = vld [vmem:[#allocation8 + $0x30] sm:$0xff]   ;;  %v515_v29 = vld [vmem:[#allocation8 + $0x38] sm:$0xff]  }
  0x50   :  { %444 = vmatpush3.bf16.msra.mxu0 %v499_v2  ;;  %452 = vmatpush3.bf16.msra.mxu1 %v501_v6  ;;  %v402_v30 = vld [vmem:[%s789_s4] ss:$0 sm:$0xff]  ;;  %s604_s4 = scalar_lea.vmem %s388_s29, 128 }
  0x51   :  { %469 = vmatprep.subr.bf16.mxu0 %v640_v0  ;;  %453 = vmatprep.subr.bf16.mxu1 %v640_v0  ;;  %v411_v39 = vld [vmem:[%s791_s6] ss:$0 sm:$0xff]  ;;  %p605_p4 = scmp.ne.s32.totalorder %s388_s29, %s604_s4  ;;  %p610_p6 = scmp.lt.s32.totalorder %s604_s4, %s604_s4 }
  0x53   :  { %446 = vmatmul.mubr.msk.bf16.vlgmr.msra.gmra.mrb[0].mxu0 %vm106_vm1, %v87_v5  ;;  %p611_p7 = por %p610_p6, %p609_p5 }
  0x54   :  { %485 = vmatprep.mubr.msk.bf16.mxu0 %vm641_vm0, %v640_v0  ;;  %454 = vmatpush3.bf16.msra.mxu1 %v502_v7 }
  0x55   :  { %455 = vmatprep.subr.bf16.mxu1 %v640_v0  ;;  %470 = vmatpush3.bf16.msra.mxu0 %v508_v13  ;;  %p612_p8 = pnand %p611_p7, %p605_p4 }
  0x56   :  { %471 = vmatprep.subr.bf16.mxu0 %v640_v0 }
  0x58   :  { %456 = vmatpush3.bf16.msra.mxu1 %v503_v8 }
  0x59   :  { %457 = vmatprep.subr.bf16.mxu1 %v640_v0  ;;  %472 = vmatpush3.bf16.msra.mxu0 %v509_v14 }
  0x5a   :  { %473 = vmatprep.subr.bf16.mxu0 %v640_v0 }
  0x5c   :  { %458 = vmatpush3.bf16.msra.mxu1 %v504_v9 }
  0x5d   :  { %459 = vmatprep.subr.bf16.mxu1 %v640_v0  ;;  %474 = vmatpush3.bf16.msra.mxu0 %v510_v15 }
  0x5e   :  { %475 = vmatprep.subr.bf16.mxu0 %v640_v0 }
  0x60   :  { %460 = vmatpush3.bf16.msra.mxu1 %v505_v10 }
  0x61   :  { %461 = vmatprep.subr.bf16.mxu1 %v640_v0  ;;  %476 = vmatpush3.bf16.msra.mxu0 %v511_v16 }
  0x62   :  { %477 = vmatprep.subr.bf16.mxu0 %v640_v0 }
  0x64   :  { %462 = vmatpush3.bf16.msra.mxu1 %v506_v11 }
  0x65   :  { %463 = vmatprep.subr.bf16.mxu1 %v640_v0  ;;  %478 = vmatpush3.bf16.msra.mxu0 %v512_v17 }
  0x66   :  { %479 = vmatprep.subr.bf16.mxu0 %v640_v0 }
  0x68   :  { %464 = vmatpush3.bf16.msra.mxu1 %v507_v12 }
  0x69   :  { %480 = vmatpush3.bf16.msra.mxu0 %v513_v18 }
  0x6a   :  { %481 = vmatprep.subr.bf16.mxu0 %v640_v0 }
  0x6d   :  { %482 = vmatpush3.bf16.msra.mxu0 %v514_v28 }
  0x6e   :  { %483 = vmatprep.subr.bf16.mxu0 %v640_v0 }
  0x71   :  { %484 = vmatpush3.bf16.msra.mxu0 %v515_v29 }
 0x126   :  { %v144_v20 = vpop.f32.mrb[0].mxu0 }
 0x127   :  { %v145_v21 = vadd.f32 %v398_v19, %v144_v20  ;;  %v447_v22 = vpop.f32.mrb[1].mxu0 }
 0x128   :  { %v147_v23 = vpop.f32.mrb[2].mxu0 }
 0x129   :  { %vm150_vm2 = vcmp.ge.f32.partialorder %v145_v21, 0.0  ;;  %v151_v24 = vmul.f32 0.01, %v145_v21  ;;  %v448_v25 = vpop.f32.mrb[3].mxu0 }
 0x12b   :  { %v152_v26 = vsel %vm150_vm2, %v145_v21, %v151_v24 }
 0x12c   :  { %v170_v27 = vpack.c.bf16 %v152_v26, %v152_v26 }
 0x12e   :  { %466 = vmatmul.mubr.bf16.vlgmr.msra.gmra.mrb[0].mxu1 %v170_v27 }
 0x201   :  { %v259_v31 = vpop.f32.mrb[0].mxu1 }
 0x202   :  { %v260_v32 = vadd.f32 %v402_v30, %v259_v31  ;;  %v467_v33 = vpop.f32.mrb[1].mxu1 }
 0x203   :  { %v262_v34 = vpop.f32.mrb[2].mxu1 }
 0x204   :  { %vm265_vm3 = vcmp.ge.f32.partialorder %v260_v32, 0.0  ;;  %v266_v35 = vmul.f32 0.01, %v260_v32  ;;  %v468_v36 = vpop.f32.mrb[3].mxu1 }
 0x206   :  { %v267_v37 = vsel %vm265_vm3, %v260_v32, %v266_v35 }
 0x207   :  { %v285_v38 = vpack.c.bf16 %v267_v37, %v267_v37 }
 0x209   :  { %486 = vmatmul.mubr.bf16.vlgmr.msra.gmra.mrb[4].mxu0 %v285_v38 }
 0x2dc   :  { %v374_v40 = vpop.f32.mrb[4].mxu0 }
 0x2dd   :  { %v375_v41 = vadd.f32 %v411_v39, %v374_v40  ;;  %v487_v42 = vpop.f32.mrb[5].mxu0 }
 0x2de   :  { %v377_v43 = vpop.f32.mrb[6].mxu0 }
 0x2df   :  { %380 = vst [vmem:[#allocation10] sm:$0xff] %v375_v41  ;;  %v488_v44 = vpop.f32.mrb[7].mxu0 }
 0x2e0   :  { %615 = shalt.err (!%p612_p8)
}
 0x2e1   :  { %s616_s6 = scalar_lea.hbm %s792_s7, 128 }
 0x2e2   :  { %p617_p9 = scmp.ne.s32.totalorder %s792_s7, %s616_s6  ;;  %p620_p10 = scmp.lt.u32.totalorder %s616_s6, %s792_s7 }
 0x2e4   :  { %p622_p11 = pnand %p620_p10, %p617_p9 }
 0x2e6   :  { %625 = shalt.err (!%p622_p11)
}
 0x2e7   :  { %390 = dma.vmem_to_hbm [thread:$0]  %s388_s29, 128, %s792_s7, [#allocation4]  }
 0x2e8   :  { %632 = dma.done.wait [#allocation4], 128  }
 0x2e9   :  { %633 = vsyncadd [#allocation4], 4294967168 }
 0x2ea   :  { %394 = vsyncpa [#allocation3], 1 }
 0x2eb   :  { %395 = vsyncpa [#allocation6], 1 }
 0x2ec   :  { %396 = vsyncpa [#allocation9], 1 }
 0x2ed   :  { %397 = vsyncpa [#allocation4], 1 }

// kernel: tpu_custom_call.1
= control target key start
LH: loop header
LB: loop body
LE: loop exit
PB: predicated region body
PF: predicated region fallthrough
CT: control target
= control target key end

     0   :  { %12 = vsyncpa [#allocation3], 0  ;;  %s785_s0 = inlined_call_operand.hbm [shape: f32[8,32], index: 0, kind: input, shape index: {}]   ;;  %s786_s1 = inlined_call_operand.hbm [shape: bf16[32,128], index: 1, kind: input, shape index: {}]   ;;  %s787_s2 = inlined_call_operand.vmem [shape: f32[1,128], index: 2, kind: input, shape index: {}]   ;;  %s788_s3 = inlined_call_operand.hbm [shape: bf16[128,128], index: 3, kind: input, shape index: {}]   ;;  %s789_s4 = inlined_call_operand.vmem [shape: f32[1,128], index: 4, kind: input, shape index: {}]   ;;  %s790_s5 = inlined_call_operand.hbm [shape: bf16[128,128], index: 5, kind: input, shape index: {}]   ;;  %s791_s6 = inlined_call_operand.vmem [shape: f32[1,128], index: 6, kind: input, shape index: {}]   ;;  %s792_s7 = inlined_call_operand.hbm [shape: f32[8,128], index: 7, kind: output, shape index: {}]  }
   0x1   :  { %13 = vsyncpa [#allocation6], 0 }
   0x2   :  { %14 = vsyncpa [#allocation9], 0 }
   0x3   :  { %15 = vsyncpa [#allocation4], 0  ;;  %s634_s24 = smov [#allocation5]   ;;  %s516_s28 = scalar_lea.hbm %s786_s1, 256 }
   0x4   :  { %s31_s25 = sshll.u32 %s634_s24, 4  ;;  %p517_p0 = scmp.ne.s32.totalorder %s786_s1, %s516_s28  ;;  %s32_s25 = int_to_ptr.vmem [resolvable:$true] %s31_s25 }
   0x5   :  { %p520_p1 = scmp.lt.u32.totalorder %s516_s28, %s786_s1 }
   0x7   :  { %p522_p2 = pnand %p520_p1, %p517_p0 }
   0x9   :  { %525 = shalt.err (!%p522_p2)
}
   0xa   :  { %s526_s10 = scalar_lea.vmem %s32_s25, 256  ;;  %p531_p4 = scmp.lt.s32.totalorder %s32_s25, %s32_s25 }
   0xb   :  { %p527_p3 = scmp.ne.s32.totalorder %s32_s25, %s526_s10  ;;  %p532_p5 = scmp.lt.s32.totalorder %s526_s10, %s526_s10 }
   0xd   :  { %p533_p6 = por %p532_p5, %p531_p4 }
   0xf   :  { %p534_p7 = pnand %p533_p6, %p527_p3 }
  0x11   :  { %537 = shalt.err (!%p534_p7)
}
  0x12   :  { %s635_s11 = smov 64   ;;  %s636_s12 = smov 4  }
  0x13   :  { %37 = dma.hbm_to_vmem [thread:$0]  %s786_s1, 256, %s32_s25, [#allocation6], %s635_s11, %s635_s11, %s636_s12  }
  0x14   :  { %s637_s15 = smov [#allocation2]   ;;  %s638_s17 = smov [#allocation7]  }
  0x15   :  { %s22_s16 = sshll.u32 %s637_s15, 4  ;;  %s45_s18 = sshll.u32 %s638_s17, 4  ;;  %s23_s16 = int_to_ptr.vmem [resolvable:$true] %s22_s16  ;;  %s46_s18 = int_to_ptr.vmem [resolvable:$true] %s45_s18 }
  0x16   :  { %s538_s21 = scalar_lea.hbm %s785_s0, 128 }
  0x17   :  { %p539_p8 = scmp.ne.s32.totalorder %s785_s0, %s538_s21  ;;  %p542_p9 = scmp.lt.u32.totalorder %s538_s21, %s785_s0 }
  0x19   :  { %p544_p10 = pnand %p542_p9, %p539_p8 }
  0x1b   :  { %547 = shalt.err (!%p544_p10)
}
  0x1c   :  { %s548_s1 = scalar_lea.vmem %s23_s16, 128  ;;  %p553_p12 = scmp.lt.s32.totalorder %s23_s16, %s23_s16 }
  0x1d   :  { %p549_p11 = scmp.ne.s32.totalorder %s23_s16, %s548_s1  ;;  %p554_p13 = scmp.lt.s32.totalorder %s548_s1, %s548_s1 }
  0x1f   :  { %p555_p0 = por %p554_p13, %p553_p12 }
  0x21   :  { %p556_p1 = pnand %p555_p0, %p549_p11 }
  0x23   :  { %559 = shalt.err (!%p556_p1)
}
  0x24   :  { %25 = dma.hbm_to_vmem [thread:$0]  %s785_s0, 128, %s23_s16, [#allocation3]  }
  0x25   :  { %s560_s30 = scalar_lea.hbm %s788_s3, 1024 }
  0x26   :  { %p561_p2 = scmp.ne.s32.totalorder %s788_s3, %s560_s30  ;;  %p564_p3 = scmp.lt.u32.totalorder %s560_s30, %s788_s3 }
  0x28   :  { %p566_p4 = pnand %p564_p3, %p561_p2 }
  0x2a   :  { %569 = shalt.err (!%p566_p4)
}
  0x2b   :  { %s570_s14 = scalar_lea.vmem %s46_s18, 1024  ;;  %p575_p6 = scmp.lt.s32.totalorder %s46_s18, %s46_s18 }
  0x2c   :  { %p571_p5 = scmp.ne.s32.totalorder %s46_s18, %s570_s14  ;;  %p576_p7 = scmp.lt.s32.totalorder %s570_s14, %s570_s14 }
  0x2e   :  { %p577_p8 = por %p576_p7, %p575_p6 }
  0x30   :  { %p578_p9 = pnand %p577_p8, %p571_p5 }
  0x32   :  { %581 = shalt.err (!%p578_p9)
}
  0x33   :  { %51 = dma.hbm_to_vmem [thread:$0]  %s788_s3, 1024, %s46_s18, [#allocation6], %s635_s11, %s635_s11, %s636_s12  }
  0x34   :  { %s639_s16 = smov [#allocation8]   ;;  %s582_s21 = scalar_lea.hbm %s790_s5, 1024 }
  0x35   :  { %s59_s17 = sshll.u32 %s639_s16, 4  ;;  %p583_p10 = scmp.ne.s32.totalorder %s790_s5, %s582_s21  ;;  %s60_s17 = int_to_ptr.vmem [resolvable:$true] %s59_s17 }
  0x36   :  { %p586_p11 = scmp.lt.u32.totalorder %s582_s21, %s790_s5 }
  0x38   :  { %p588_p12 = pnand %p586_p11, %p583_p10 }
  0x3a   :  { %591 = shalt.err (!%p588_p12)
}
  0x3b   :  { %s592_s1 = scalar_lea.vmem %s60_s17, 1024  ;;  %p597_p0 = scmp.lt.s32.totalorder %s60_s17, %s60_s17 }
  0x3c   :  { %p593_p13 = scmp.ne.s32.totalorder %s60_s17, %s592_s1  ;;  %p598_p1 = scmp.lt.s32.totalorder %s592_s1, %s592_s1 }
  0x3e   :  { %p599_p2 = por %p598_p1, %p597_p0 }
  0x40   :  { %p600_p3 = pnand %p599_p2, %p593_p13 }
  0x42   :  { %603 = shalt.err (!%p600_p3)
}
  0x43   :  { %65 = dma.hbm_to_vmem [thread:$0]  %s790_s5, 1024, %s60_s17, [#allocation9], %s635_s11, %s635_s11, %s636_s12  }
  0x44   :  { %626 = dma.done.wait [#allocation3], 128  }
  0x45   :  { %627 = vsyncadd [#allocation3], 4294967168 }
  0x46   :  { %628 = dma.done.wait [#allocation6], 1280  }
  0x47   :  { %629 = vsyncadd [#allocation6], 4294966016 }
  0x48   :  { %630 = dma.done.wait [#allocation9], 1024  }
  0x49   :  { %631 = vsyncadd [#allocation9], 4294966272  ;;  %v640_v0 = vmov 0.0   ;;  %vm641_vm0 = vmmov 0   ;;  %v498_v1 = vld [vmem:[#allocation5] sm:$0xff]   ;;  %v499_v2 = vld [vmem:[#allocation5 + $0x8] sm:$0xff]  }
  0x4a   :  { %441 = vmatprep.subr.bf16.mxu0 %v640_v0  ;;  %445 = vmatprep.mubr.msk.bf16.mxu0 %vm641_vm0, %v640_v0  ;;  %v81_v3 = vld [vmem:[#allocation2] sm:$0xff]  ;;  %v500_v4 = vld [vmem:[#allocation7] sm:$0xff]   ;;  %vm106_vm1 = vcmask 261120   ;;  %v502_v7 = vld [vmem:[#allocation7 + $0x10] sm:$0xff]   ;;  %s642_s28 = smov [#allocation10]  }
  0x4b   :  { %449 = vmatprep.subr.bf16.mxu1 %v640_v0  ;;  %465 = vmatprep.mubr.msk.bf16.mxu1 %vm641_vm0, %v640_v0  ;;  %v87_v5 = vpack.c.bf16 %v81_v3, %v81_v3  ;;  %v501_v6 = vld [vmem:[#allocation7 + $0x8] sm:$0xff]   ;;  %v503_v8 = vld [vmem:[#allocation7 + $0x18] sm:$0xff]   ;;  %v504_v9 = vld [vmem:[#allocation7 + $0x20] sm:$0xff]   ;;  %s387_s29 = sshll.u32 %s642_s28, 4  ;;  %s388_s29 = int_to_ptr.vmem [resolvable:$true] %s387_s29 }
  0x4c   :  { %442 = vmatpush3.bf16.msra.mxu0 %v498_v1  ;;  %450 = vmatpush3.bf16.msra.mxu1 %v500_v4  ;;  %v505_v10 = vld [vmem:[#allocation7 + $0x28] sm:$0xff]   ;;  %v506_v11 = vld [vmem:[#allocation7 + $0x30] sm:$0xff]   ;;  %v507_v12 = vld [vmem:[#allocation7 + $0x38] sm:$0xff]   ;;  %p609_p5 = scmp.lt.s32.totalorder %s388_s29, %s388_s29 }
  0x4d   :  { %443 = vmatprep.subr.bf16.mxu0 %v640_v0  ;;  %451 = vmatprep.subr.bf16.mxu1 %v640_v0  ;;  %v508_v13 = vld [vmem:[#allocation8] sm:$0xff]   ;;  %v509_v14 = vld [vmem:[#allocation8 + $0x8] sm:$0xff]   ;;  %v510_v15 = vld [vmem:[#allocation8 + $0x10] sm:$0xff]  }
  0x4e   :  { %v511_v16 = vld [vmem:[#allocation8 + $0x18] sm:$0xff]   ;;  %v512_v17 = vld [vmem:[#allocation8 + $0x20] sm:$0xff]   ;;  %v513_v18 = vld [vmem:[#allocation8 + $0x28] sm:$0xff]  }
  0x4f   :  { %v398_v19 = vld [vmem:[%s787_s2] ss:$0 sm:$0xff]  ;;  %v514_v28 = vld [vmem:[#allocation8 + $0x30] sm:$0xff]   ;;  %v515_v29 = vld [vmem:[#allocation8 + $0x38] sm:$0xff]  }
  0x50   :  { %444 = vmatpush3.bf16.msra.mxu0 %v499_v2  ;;  %452 = vmatpush3.bf16.msra.mxu1 %v501_v6  ;;  %v402_v30 = vld [vmem:[%s789_s4] ss:$0 sm:$0xff]  ;;  %s604_s4 = scalar_lea.vmem %s388_s29, 128 }
  0x51   :  { %469 = vmatprep.subr.bf16.mxu0 %v640_v0  ;;  %453 = vmatprep.subr.bf16.mxu1 %v640_v0  ;;  %v411_v39 = vld [vmem:[%s791_s6] ss:$0 sm:$0xff]  ;;  %p605_p4 = scmp.ne.s32.totalorder %s388_s29, %s604_s4  ;;  %p610_p6 = scmp.lt.s32.totalorder %s604_s4, %s604_s4 }
  0x53   :  { %446 = vmatmul.mubr.msk.bf16.vlgmr.msra.gmra.mrb[0].mxu0 %vm106_vm1, %v87_v5  ;;  %p611_p7 = por %p610_p6, %p609_p5 }
  0x54   :  { %485 = vmatprep.mubr.msk.bf16.mxu0 %vm641_vm0, %v640_v0  ;;  %454 = vmatpush3.bf16.msra.mxu1 %v502_v7 }
  0x55   :  { %455 = vmatprep.subr.bf16.mxu1 %v640_v0  ;;  %470 = vmatpush3.bf16.msra.mxu0 %v508_v13  ;;  %p612_p8 = pnand %p611_p7, %p605_p4 }
  0x56   :  { %471 = vmatprep.subr.bf16.mxu0 %v640_v0 }
  0x58   :  { %456 = vmatpush3.bf16.msra.mxu1 %v503_v8 }
  0x59   :  { %457 = vmatprep.subr.bf16.mxu1 %v640_v0  ;;  %472 = vmatpush3.bf16.msra.mxu0 %v509_v14 }
  0x5a   :  { %473 = vmatprep.subr.bf16.mxu0 %v640_v0 }
  0x5c   :  { %458 = vmatpush3.bf16.msra.mxu1 %v504_v9 }
  0x5d   :  { %459 = vmatprep.subr.bf16.mxu1 %v640_v0  ;;  %474 = vmatpush3.bf16.msra.mxu0 %v510_v15 }
  0x5e   :  { %475 = vmatprep.subr.bf16.mxu0 %v640_v0 }
  0x60   :  { %460 = vmatpush3.bf16.msra.mxu1 %v505_v10 }
  0x61   :  { %461 = vmatprep.subr.bf16.mxu1 %v640_v0  ;;  %476 = vmatpush3.bf16.msra.mxu0 %v511_v16 }
  0x62   :  { %477 = vmatprep.subr.bf16.mxu0 %v640_v0 }
  0x64   :  { %462 = vmatpush3.bf16.msra.mxu1 %v506_v11 }
  0x65   :  { %463 = vmatprep.subr.bf16.mxu1 %v640_v0  ;;  %478 = vmatpush3.bf16.msra.mxu0 %v512_v17 }
  0x66   :  { %479 = vmatprep.subr.bf16.mxu0 %v640_v0 }
  0x68   :  { %464 = vmatpush3.bf16.msra.mxu1 %v507_v12 }
  0x69   :  { %480 = vmatpush3.bf16.msra.mxu0 %v513_v18 }
  0x6a   :  { %481 = vmatprep.subr.bf16.mxu0 %v640_v0 }
  0x6d   :  { %482 = vmatpush3.bf16.msra.mxu0 %v514_v28 }
  0x6e   :  { %483 = vmatprep.subr.bf16.mxu0 %v640_v0 }
  0x71   :  { %484 = vmatpush3.bf16.msra.mxu0 %v515_v29 }
 0x126   :  { %v144_v20 = vpop.f32.mrb[0].mxu0 }
 0x127   :  { %v145_v21 = vadd.f32 %v398_v19, %v144_v20  ;;  %v447_v22 = vpop.f32.mrb[1].mxu0 }
 0x128   :  { %v147_v23 = vpop.f32.mrb[2].mxu0 }
 0x129   :  { %vm150_vm2 = vcmp.ge.f32.partialorder %v145_v21, 0.0  ;;  %v151_v24 = vmul.f32 0.01, %v145_v21  ;;  %v448_v25 = vpop.f32.mrb[3].mxu0 }
 0x12b   :  { %v152_v26 = vsel %vm150_vm2, %v145_v21, %v151_v24 }
 0x12c   :  { %v170_v27 = vpack.c.bf16 %v152_v26, %v152_v26 }
 0x12e   :  { %466 = vmatmul.mubr.bf16.vlgmr.msra.gmra.mrb[0].mxu1 %v170_v27 }
 0x201   :  { %v259_v31 = vpop.f32.mrb[0].mxu1 }
 0x202   :  { %v260_v32 = vadd.f32 %v402_v30, %v259_v31  ;;  %v467_v33 = vpop.f32.mrb[1].mxu1 }
 0x203   :  { %v262_v34 = vpop.f32.mrb[2].mxu1 }
 0x204   :  { %vm265_vm3 = vcmp.ge.f32.partialorder %v260_v32, 0.0  ;;  %v266_v35 = vmul.f32 0.01, %v260_v32  ;;  %v468_v36 = vpop.f32.mrb[3].mxu1 }
 0x206   :  { %v267_v37 = vsel %vm265_vm3, %v260_v32, %v266_v35 }
 0x207   :  { %v285_v38 = vpack.c.bf16 %v267_v37, %v267_v37 }
 0x209   :  { %486 = vmatmul.mubr.bf16.vlgmr.msra.gmra.mrb[4].mxu0 %v285_v38 }
 0x2dc   :  { %v374_v40 = vpop.f32.mrb[4].mxu0 }
 0x2dd   :  { %v375_v41 = vadd.f32 %v411_v39, %v374_v40  ;;  %v487_v42 = vpop.f32.mrb[5].mxu0 }
 0x2de   :  { %v377_v43 = vpop.f32.mrb[6].mxu0 }
 0x2df   :  { %380 = vst [vmem:[#allocation10] sm:$0xff] %v375_v41  ;;  %v488_v44 = vpop.f32.mrb[7].mxu0 }
 0x2e0   :  { %615 = shalt.err (!%p612_p8)
}
 0x2e1   :  { %s616_s6 = scalar_lea.hbm %s792_s7, 128 }
 0x2e2   :  { %p617_p9 = scmp.ne.s32.totalorder %s792_s7, %s616_s6  ;;  %p620_p10 = scmp.lt.u32.totalorder %s616_s6, %s792_s7 }
 0x2e4   :  { %p622_p11 = pnand %p620_p10, %p617_p9 }
 0x2e6   :  { %625 = shalt.err (!%p622_p11)
}
 0x2e7   :  { %390 = dma.vmem_to_hbm [thread:$0]  %s388_s29, 128, %s792_s7, [#allocation4]  }
 0x2e8   :  { %632 = dma.done.wait [#allocation4], 128  }
 0x2e9   :  { %633 = vsyncadd [#allocation4], 4294967168 }
 0x2ea   :  { %394 = vsyncpa [#allocation3], 1 }
 0x2eb   :  { %395 = vsyncpa [#allocation6], 1 }
 0x2ec   :  { %396 = vsyncpa [#allocation9], 1 }
 0x2ed   :  { %397 = vsyncpa [#allocation4], 1 }

</bundles_post_ra>
